<compile_context>
chip_gen: v7x
topology: tpu7x:2x2x1
jax: 0.10.0
libtpu: 0.0.40
codegen_flags: <defaults>
</compile_context>

<pallas_src>
import functools
import math

import jax
import jax.numpy as jnp
from jax.experimental import pallas as pl
from jax.experimental.pallas import tpu as pltpu


def _round_up(v: int, mult: int) -> int:
    return (v + mult - 1) // mult * mult


def _vmem_capacity_bytes() -> int:
    try:
        return int(pltpu.get_tpu_info().vmem_capacity_bytes)
    except Exception:
        return 64 * 1024 * 1024  # conservative fallback (v7x per-TC VMEM)


def _buffered_spec(block_shape, index_map, buffers):
    """BlockSpec with an explicit buffer count; falls back to the default
    double-buffered spec if this JAX build rejects pipeline_mode."""
    try:
        return pl.BlockSpec(block_shape, index_map,
                            pipeline_mode=pl.Buffered(buffers))
    except Exception:
        return pl.BlockSpec(block_shape, index_map)


def _largest_divisor_tile(total, unit, cap):
    best = None
    q = total // unit
    for k in range(1, q + 1):
        if q % k == 0 and unit * k <= cap:
            best = unit * k
    return best


def _choose_tn(out_features: int, cap: int = 1024) -> int:
    """N tile: only tile when out_features is lane-aligned and big; the tile
    always divides out_features so no output padding/slicing is ever needed."""
    if out_features % 128 != 0 or out_features <= cap:
        return out_features
    if out_features % 256 == 0:          # 256-wide tiles fill v6e/v7x MXU passes
        tn = _largest_divisor_tile(out_features, 256, cap)
        if tn is not None:
            return tn
    tn = _largest_divisor_tile(out_features, 128, cap)
    return tn if tn is not None else out_features


def _lora_kernel(x_ref, a_ref, b_ref, o_ref, xa_ref, *, phi):
    # xa = (x @ A) * phi computed once per M tile (j == 0), reused for every
    # N tile of that row block.
    @pl.when(pl.program_id(1) == 0)
    def _():
        xa = jnp.dot(x_ref[...], a_ref[...], preferred_element_type=jnp.float32)
        xa_ref[...] = xa * phi

    out = jnp.dot(xa_ref[...].astype(b_ref.dtype), b_ref[...],
                  preferred_element_type=jnp.float32)
    o_ref[...] = out.astype(o_ref.dtype)


def lora_forward(x, A, B, phi, *, tm=None, tn=None):
    """LoRA forward: x[..., in_features] -> [..., out_features]."""
    in_features, rank = A.shape
    rank_b, out_features = B.shape
    assert rank == rank_b and x.shape[-1] == in_features

    lead = x.shape[:-1]
    m = int(math.prod(lead)) if lead else 1
    if m == 0:
        return jnp.zeros((*lead, out_features), dtype=x.dtype)
    x2d = x.reshape(m, in_features)

    dtype = x2d.dtype
    itemsize = jnp.dtype(dtype).itemsize
    sub = {4: 8, 2: 16, 1: 32}.get(itemsize, 8)   # sublane multiple per dtype

    # Rank padded to a lane multiple (A/B are tiny; x/out are never touched).
    r_p = _round_up(rank, 128)
    A_p = A if r_p == rank else jnp.pad(A, ((0, 0), (0, r_p - rank)))
    B_p = B if r_p == rank else jnp.pad(B, ((0, r_p - rank), (0, 0)))

    # ---- N (out_features) tile --------------------------------------------
    if tn is None:
        tn = _choose_tn(out_features)
    grid_n = pl.cdiv(out_features, tn)

    # ---- VMEM budget & M tile ----------------------------------------------
    vmem_cap = _vmem_capacity_bytes()
    avail = int(vmem_cap * 0.85)                  # headroom for internals

    b_bufs = 1 if grid_n == 1 else 2              # B grid-invariant when untiled
    fixed = in_features * r_p * itemsize          # A, single-buffered
    fixed += b_bufs * r_p * tn * itemsize         # B tile(s)
    per_row = (2 * in_features * itemsize         # x tile, double-buffered
               + 2 * tn * itemsize                # out tile, double-buffered
               + r_p * 4)                         # xa f32 scratch
    if tm is None:
        budget = max(avail - fixed - (2 << 20), per_row * sub)
        tm_budget = max(sub, (budget // per_row) // sub * sub)
        # Guarantee >= 2 (preferably >= 4) M steps: shards the "parallel" axis
        # across v7x's two TensorCores and gives the DMA pipeline overlap.
        if m >= 4 * sub:
            tm_par = _round_up(pl.cdiv(m, 4), sub)
        elif m >= 2 * sub:
            tm_par = _round_up(pl.cdiv(m, 2), sub)
        else:
            tm_par = _round_up(m, sub)
        tm = max(sub, min(tm_budget, tm_par, 2048))
        if tm >= m:
            tm = m          # single full-extent block (legal for any size)
    grid_m = pl.cdiv(m, tm)

    est = fixed + tm * per_row
    vmem_limit = int(min(avail, max(32 * 1024 * 1024, 1.25 * est)))

    kernel = functools.partial(_lora_kernel, phi=float(phi))

    out2d = pl.pallas_call(
        kernel,
        out_shape=jax.ShapeDtypeStruct((m, out_features), dtype),
        grid=(grid_m, grid_n),
        in_specs=[
            # x row tiles; block index constant across j so the tile stays
            # VMEM-resident while all N tiles of this row block are produced.
            pl.BlockSpec((tm, in_features), lambda i, j: (i, 0)),
            # A: grid-invariant -> single-buffered (saves a full weight copy).
            _buffered_spec((in_features, r_p), lambda i, j: (0, 0), 1),
            # B: streamed over N tiles (resident & single-buffered if untiled).
            _buffered_spec((r_p, tn), lambda i, j: (0, j), b_bufs),
        ],
        out_specs=pl.BlockSpec((tm, tn), lambda i, j: (i, j)),
        scratch_shapes=[pltpu.VMEM((tm, r_p), jnp.float32)],
        compiler_params=pltpu.CompilerParams(
            dimension_semantics=("parallel", "arbitrary"),
            vmem_limit_bytes=vmem_limit,
        ),
        cost_estimate=pl.CostEstimate(
            flops=2 * m * r_p * (in_features + out_features),
            transcendentals=0,
            bytes_accessed=(m * (in_features + out_features)
                            + in_features * r_p + r_p * out_features) * itemsize,
        ),
    )(x2d, A_p, B_p)

    return out2d.reshape(*lead, out_features)


if __name__ == "__main__":
    k1, k2, k3, k4, k5, k6 = jax.random.split(jax.random.PRNGKey(0), 6)

    def reference(x, A, B, phi):
        lead = x.shape[:-1]
        y = x.reshape(-1, x.shape[-1]) @ A @ B * phi
        return y.reshape(*lead, B.shape[-1])

    # --- Test 1: module-consistent small shapes (batch=2, seq=8, hidden=32) --
    in_features, out_features, rank, alpha = 32, 32, 8, 16.0
    batch, seq = 2, 8
    stdev = 1.0 / math.sqrt(rank)
    # LoRALayer.__init__ uses A = randn(in, rank)/sqrt(rank) and B = zeros.
    # A zero B makes the allclose check vacuous, so use a random nonzero B.
    A = jax.random.normal(k1, (in_features, rank), dtype=jnp.float32) * stdev
    B = jax.random.normal(k2, (rank, out_features), dtype=jnp.float32)
    phi = alpha / math.sqrt(rank)                 # matches self.phi
    x = jax.random.normal(k3, (batch, seq, in_features), dtype=jnp.float32)

    y = jax.block_until_ready(lora_forward(x, A, B, phi))
    y_ref = reference(x, A, B, phi)
    assert y.shape == (batch, seq, out_features)
    err1 = float(jnp.max(jnp.abs(y - y_ref)))
    assert jnp.allclose(y, y_ref, rtol=2e-3, atol=2e-3), f"max abs err {err1}"

    # --- Test 2: unaligned shapes (exercises partial M tile & full-dim blocks)
    in2, out2, rank2, alpha2 = 48, 40, 4, 8.0
    batch2, seq2 = 4, 5                            # m = 20 -> tm=16, partial tile
    A2 = jax.random.normal(k4, (in2, rank2), dtype=jnp.float32) / math.sqrt(rank2)
    B2 = jax.random.normal(k5, (rank2, out2), dtype=jnp.float32)
    phi2 = alpha2 / math.sqrt(rank2)
    x2 = jax.random.normal(k6, (batch2, seq2, in2), dtype=jnp.float32)

    y2 = jax.block_until_ready(lora_forward(x2, A2, B2, phi2))
    y2_ref = reference(x2, A2, B2, phi2)
    assert y2.shape == (batch2, seq2, out2)
    err2 = float(jnp.max(jnp.abs(y2 - y2_ref)))
    assert jnp.allclose(y2, y2_ref, rtol=2e-3, atol=2e-3), f"max abs err {err2}"

    print("KERNEL_OK")
</pallas_src>

<mosaic_0001>
module attributes {stable_mosaic.version = 11 : i64} {
  func.func @_lora_kernel(%arg0: i32, %arg1: i32, %arg2: memref<8x32xf32, #tpu.memory_space<vmem>>, %arg3: memref<32x128xf32, #tpu.memory_space<vmem>>, %arg4: memref<128x32xf32, #tpu.memory_space<vmem>>, %arg5: memref<8x32xf32, #tpu.memory_space<vmem>>, %arg6: memref<8x128xf32, #tpu.memory_space<vmem>>) attributes {dimension_semantics = [#tpu.dimension_semantics<parallel>, #tpu.dimension_semantics<arbitrary>], iteration_bounds = array<i64: 2, 1>, scalar_prefetch = 0 : i64, scratch_operands = 1 : i64, tpu.core_type = #tpu.core_type<tc>, window_params = [{transform_indices = @transform_0, window_bounds = array<i64: 8, 32>}, {pipeline_mode = #tpu.pipeline_mode<synchronous>, transform_indices = @transform_1, window_bounds = array<i64: 32, 128>}, {pipeline_mode = #tpu.pipeline_mode<synchronous>, transform_indices = @transform_2, window_bounds = array<i64: 128, 32>}, {transform_indices = @transform_3, window_bounds = array<i64: 8, 32>}]} {
    %c0_i32 = arith.constant 0 : i32
    %0 = arith.cmpi eq, %arg1, %c0_i32 : i32
    %1 = arith.extui %0 : i1 to i32
    %c0_i32_0 = arith.constant 0 : i32
    %2 = arith.cmpi ne, %1, %c0_i32_0 : i32
    scf.if %2 {
      %c0_6 = arith.constant 0 : index
      %c0_7 = arith.constant 0 : index
      %7 = vector.load %arg2[%c0_6, %c0_7] : memref<8x32xf32, #tpu.memory_space<vmem>>, vector<8x32xf32>
      %c0_8 = arith.constant 0 : index
      %c0_9 = arith.constant 0 : index
      %8 = vector.load %arg3[%c0_8, %c0_9] : memref<32x128xf32, #tpu.memory_space<vmem>>, vector<32x128xf32>
      %cst_10 = arith.constant dense<0.000000e+00> : vector<8x128xf32>
      %9 = tpu.matmul %7, %8, %cst_10 {dimension_numbers = #tpu.dot_dimension_numbers<[1], [0], [0], [1], [0, 0, 1, 1], [], []>} : vector<8x32xf32>, vector<32x128xf32>, vector<8x128xf32> -> vector<8x128xf32>
      %cst_11 = arith.constant 5.65685415 : f32
      %10 = vector.broadcast %cst_11 : f32 to vector<8x128xf32>
      %11 = arith.mulf %9, %10 : vector<8x128xf32>
      %c0_12 = arith.constant 0 : index
      %c0_13 = arith.constant 0 : index
      %12 = vector.load %arg6[%c0_12, %c0_13] : memref<8x128xf32, #tpu.memory_space<vmem>>, vector<8x128xf32>
      tpu.vector_store %arg6[%c0_12, %c0_13], %11 {strides = array<i32>} : memref<8x128xf32, #tpu.memory_space<vmem>>, vector<8x128xf32>,
    } else {
    }
    %c0 = arith.constant 0 : index
    %c0_1 = arith.constant 0 : index
    %3 = vector.load %arg6[%c0, %c0_1] : memref<8x128xf32, #tpu.memory_space<vmem>>, vector<8x128xf32>
    %c0_2 = arith.constant 0 : index
    %c0_3 = arith.constant 0 : index
    %4 = vector.load %arg4[%c0_2, %c0_3] : memref<128x32xf32, #tpu.memory_space<vmem>>, vector<128x32xf32>
    %cst = arith.constant dense<0.000000e+00> : vector<8x32xf32>
    %5 = tpu.matmul %3, %4, %cst {dimension_numbers = #tpu.dot_dimension_numbers<[1], [0], [0], [1], [0, 0, 1, 1], [], []>} : vector<8x128xf32>, vector<128x32xf32>, vector<8x32xf32> -> vector<8x32xf32>
    %c0_4 = arith.constant 0 : index
    %c0_5 = arith.constant 0 : index
    %6 = vector.load %arg5[%c0_4, %c0_5] : memref<8x32xf32, #tpu.memory_space<vmem>>, vector<8x32xf32>
    tpu.vector_store %arg5[%c0_4, %c0_5], %5 {strides = array<i32>} : memref<8x32xf32, #tpu.memory_space<vmem>>, vector<8x32xf32>,
    return
  }
  func.func @transform_0(%arg0: i32, %arg1: i32) -> (i32, i32) {
    %c0_i32 = arith.constant 0 : i32
    %c0_i32_0 = arith.constant 0 : i32
    return %arg0, %c0_i32 : i32, i32
  }
  func.func @transform_1(%arg0: i32, %arg1: i32) -> (i32, i32) {
    %c0_i32 = arith.constant 0 : i32
    %c0_i32_0 = arith.constant 0 : i32
    %c0_i32_1 = arith.constant 0 : i32
    return %c0_i32, %c0_i32_0 : i32, i32
  }
  func.func @transform_2(%arg0: i32, %arg1: i32) -> (i32, i32) {
    %c0_i32 = arith.constant 0 : i32
    %c0_i32_0 = arith.constant 0 : i32
    return %c0_i32, %arg1 : i32, i32
  }
  func.func @transform_3(%arg0: i32, %arg1: i32) -> (i32, i32) {
    %c0_i32 = arith.constant 0 : i32
    return %arg0, %arg1 : i32, i32
  }
}

</mosaic_0001>

<bundles_post_ra>
// kernel: tpu_custom_call.1
= control target key start
LH: loop header
LB: loop body
LE: loop exit
PB: predicated region body
PF: predicated region fallthrough
CT: control target
= control target key end

     0   :  { %8 = vsyncpa [#allocation4], 0  ;;  %s916_s0 = inlined_call_operand.vmem [shape: f32[16,32], index: 0, kind: input, shape index: {}]   ;;  %s917_s1 = inlined_call_operand.vmem [shape: f32[32,128], index: 1, kind: input, shape index: {}]   ;;  %s918_s2 = inlined_call_operand.vmem [shape: f32[128,32], index: 2, kind: input, shape index: {}]   ;;  %s919_s3 = inlined_call_operand.hbm [shape: f32[16,32], index: 3, kind: output, shape index: {}]  }
   0x1   :  { %10 = vsyncpa [#allocation4 + $0x1], 0  ;;  %s742_s12 = smov 0   ;;  %s744_s13 = smov 0  }
   0x2   :  { %s746_s14 = smov 0   ;;  %s748_s15 = smov 0  }
   0x3   :  { %s750_s16 = smov 0   ;;  %s752_s17 = smov 0  }
   0x4 LB: > { %s469_s18 = sadd.s32 4294967295, %s716_s17   ;;  %s470_s19 = sadd.s32 4294967294, %s716_s17   ;;  %s716_s17 = sphi %s752_s17, %s16_s17   ;;  %s712_s16 = sphi %s750_s16, %s926_s16   ;;  %s708_s15 = sphi %s748_s15, %s925_s15   ;;  %s704_s14 = sphi %s746_s14, %s924_s14   ;;  %s700_s13 = sphi %s744_s13, %s923_s13   ;;  %s696_s12 = sphi %s742_s12, %s922_s12  }
   0x5   : > { %s28_s20 = sadd.s32 1, %s712_s16  ;;  %s110_s21 = sadd.s32 1, %s704_s14 }
   0x6   : > { %p30_p0 = scmp.ge.s32.totalorder %s28_s20, 2  ;;  %p120_p1 = scmp.ne.s32.totalorder %s704_s14, %s700_s13 }
   0x7   : > { %p121_p2 = scmp.eq.s32.totalorder %s469_s18, 1  ;;  %p126_p3 = scmp.ne.s32.totalorder %s700_s13, %s696_s12 }
   0x8   : > { %s928_s20 = smov (%p30_p0, %s28_s20), 0  ;;  %p127_p5 = scmp.eq.s32.totalorder %s470_s19, 1 }
   0x9   : > { %p782_p4 = por %p121_p2, %p120_p1  ;;  %s105_s23 = ssub.s32 %s712_s16, %s928_s20 }
   0xa   : > { %p474_p6 = scmp.ge.s32.totalorder %s716_s17, 1  ;;  %p108_p7 = scmp.eq.s32.totalorder %s105_s23, 0 }
   0xb   : > { %p789_p8 = por %p127_p5, %p126_p3  ;;  %p162_p9 = scmp.lt.s32.totalorder %s716_s17, 3 }
   0xc   : > { %s795_s25 = scalar_select %p108_p7, %s704_s14, %s110_s21  }
   0xd   : > { %p163_p10 = pnand %p474_p6, %p162_p9 }
   0xe   : > { %v202_v0 = vld [vmem:[%s917_s1] sm:$0xff] (!%p163_p10)  ;;  %v203_v1 = vld [vmem:[%s917_s1 + $0x8] sm:$0xff] (!%p163_p10)  ;;  %v204_v2 = vld [vmem:[%s917_s1 + $0x10] sm:$0xff] (!%p163_p10)  ;;  %v718_v3 = vmov (!%p163_p10), 0.0|0.0   ;;  %vm719_vm0 = vmmov (!%p163_p10), 0   ;;  %v720_v6 = vmov (!%p163_p10), 0.0  }
   0xf   : > { %166 = sbr.rel (%p163_p10) target bundleno = 467 (0x1d3), region = 32  ;;  %550 = vmatprep.subr.bf16.mxu0 (!%p163_p10), %v718_v3  ;;  %v551_v4 = vpack.c.bf16 (!%p163_p10), %v203_v1, %v202_v0  ;;  %v205_v5 = vld [vmem:[%s917_s1 + $0x18] sm:$0xff] (!%p163_p10)  ;;  %512 = vmatprep.mubr.msk.f32.mxu0 (!%p163_p10), %vm719_vm0, %v720_v6  ;;  %p189_p11 = scmp.lt.s32.totalorder (!%p163_p10), %s708_s15, 1  ;;  %v283_v7 = vld [vmem:[%s918_s2] sm:$0xff] (!%p163_p10)  ;;  %v284_v8 = vld [vmem:[%s918_s2 + $0x8] sm:$0xff] (!%p163_p10)  ;;  %vm206_vm1 = vcmask (!%p163_p10), 261120  }
  0x10   : > { %556 = vmatprep.subr.bf16.mxu1 (!%p163_p10), %v718_v3  ;;  %v557_v9 = vpack.c.bf16 (!%p163_p10), %v284_v8, %v283_v7  ;;  %v285_v10 = vld [vmem:[%s918_s2 + $0x10] sm:$0xff] (!%p163_p10)  ;;  %v286_v11 = vld [vmem:[%s918_s2 + $0x18] sm:$0xff] (!%p163_p10)  ;;  %547 = vmatprep.mubr.msk.f32.mxu1 (!%p163_p10), %vm719_vm0, %v720_v6  ;;  %v554_v12 = vpack.c.bf16 (!%p163_p10), %v205_v5, %v204_v2  ;;  %v287_v14 = vld [vmem:[%s918_s2 + $0x20] sm:$0xff] (!%p163_p10)  ;;  %s186_s10 = sand.u32 (!%p163_p10), 1, %s700_s13   ;;  %s479_s18 = sshll.u32 (!%p163_p10), %s708_s15, 7 }
  0x11   : > { %552 = vmatpush3.bf16.msra.mxu0 (!%p163_p10), %v551_v4  ;;  %v560_v13 = vpack.c.bf16 (!%p163_p10), %v286_v11, %v285_v10  ;;  %v288_v15 = vld [vmem:[%s918_s2 + $0x28] sm:$0xff] (!%p163_p10)  ;;  %v289_v18 = vld [vmem:[%s918_s2 + $0x30] sm:$0xff] (!%p163_p10)  ;;  %v290_v19 = vld [vmem:[%s918_s2 + $0x38] sm:$0xff] (!%p163_p10)  ;;  %s475_s11 = sshll.u32 (!%p163_p10), %s186_s10, 3  ;;  %s868_s27 = scalar_lea.hbm (!%p163_p10), %s919_s3, %s479_s18 }
  0x12   : > { %553 = vmatprep.subr.bf16.mxu0 (!%p163_p10), %v718_v3  ;;  %558 = vmatpush3.bf16.msra.mxu1 (!%p163_p10), %v557_v9  ;;  %v563_v17 = vpack.c.bf16 (!%p163_p10), %v288_v15, %v287_v14  ;;  %v566_v20 = vpack.c.bf16 (!%p163_p10), %v290_v19, %v289_v18  ;;  %v291_v21 = vld [vmem:[%s918_s2 + $0x40] sm:$0xff] (!%p163_p10)  ;;  %v292_v22 = vld [vmem:[%s918_s2 + $0x48] sm:$0xff] (!%p163_p10)  ;;  %v293_v24 = vld [vmem:[%s918_s2 + $0x50] sm:$0xff] (!%p163_p10)  ;;  %s188_s19 = scalar_lea.vmem (!%p163_p10), [#allocation3], %s475_s11  ;;  %s372_s28 = scalar_lea.sflag (!%p163_p10), [#allocation4], %s186_s10 }
  0x13   : > { %559 = vmatprep.subr.bf16.mxu1 (!%p163_p10), %v718_v3  ;;  %v569_v23 = vpack.c.bf16 (!%p163_p10), %v292_v22, %v291_v21  ;;  %v294_v25 = vld [vmem:[%s918_s2 + $0x58] sm:$0xff] (!%p163_p10)  ;;  %v295_v27 = vld [vmem:[%s918_s2 + $0x60] sm:$0xff] (!%p163_p10)  ;;  %v296_v28 = vld [vmem:[%s918_s2 + $0x68] sm:$0xff] (!%p163_p10)  ;;  %s386_s21 = sshll.u32 (!%p163_p10), %s188_s19, 4  ;;  %s870_s21 = int_to_ptr.vmem [resolvable:$true] %s386_s21 }
  0x14   : > { %v572_v26 = vpack.c.bf16 (!%p163_p10), %v294_v25, %v293_v24  ;;  %v575_v29 = vpack.c.bf16 (!%p163_p10), %v296_v28, %v295_v27  ;;  %v297_v30 = vld [vmem:[%s918_s2 + $0x70] sm:$0xff] (!%p163_p10)  ;;  %v298_v31 = vld [vmem:[%s918_s2 + $0x78] sm:$0xff] (!%p163_p10)  ;;  %s638_s29 = scalar_lea.vmem (!%p163_p10), %s870_s21, 128 }
  0x15   : > { %555 = vmatpush3.bf16.msra.mxu0 (!%p163_p10), %v554_v12  ;;  %v578_v32 = vpack.c.bf16 (!%p163_p10), %v298_v31, %v297_v30  ;;  %p639_p12 = scmp.ne.s32.totalorder (!%p163_p10), %s870_s21, %s638_s29 }
  0x16   : > { %s190_s23 = scalar_select %p189_p11, %s708_s15, 1  ;;  %561 = vmatpush3.bf16.msra.mxu1 %v560_v13 }
  0x17   : > { %562 = vmatprep.subr.bf16.mxu1 %v718_v3  ;;  %p640_p13 = pnand %p639_p12, %p782_p4  ;;  %s721_s15 = smov [#allocation3]  }
  0x18   : > { %s476_s26 = sshll.u32 %s190_s23, 3  ;;  %s642_s30 = sshll.u32 %s721_s15, 4  ;;  %s643_s30 = int_to_ptr.vmem [resolvable:$false] %s642_s30 }
  0x19   : > { %s192_s6 = scalar_lea.vmem %s916_s0, %s476_s26  ;;  %p641_p0 = pneg %p640_p13 }
  0x1a   : > { %v201_v16 = vld [vmem:[%s192_s6] sm:$0xff]  ;;  %564 = vmatpush3.bf16.msra.mxu1 %v563_v17  ;;  %s644_s4 = scalar_lea.vmem %s643_s30, 256  ;;  %p645_p1 = scmp.lt.s32.totalorder %s870_s21, %s643_s30 }
  0x1b   : > { %513 = vmatmul.mubr.msk.f32.vlgmr.msra.gmra.mrb[0].mxu0 %vm206_vm1, %v201_v16  ;;  %565 = vmatprep.subr.bf16.mxu1 %v718_v3  ;;  %p646_p2 = scmp.lt.s32.totalorder %s644_s4, %s638_s29 }
  0x1d   : > { %p647_p3 = por %p646_p2, %p645_p1 }
  0x1e   : > { %567 = vmatpush3.bf16.msra.mxu1 %v566_v20 }
  0x1f   : > { %568 = vmatprep.subr.bf16.mxu1 %v718_v3  ;;  %p648_p5 = pnand %p647_p3, %p641_p0 }
  0x22   : > { %570 = vmatpush3.bf16.msra.mxu1 %v569_v23 }
  0x23   : > { %571 = vmatprep.subr.bf16.mxu1 %v718_v3 }
  0x26   : > { %573 = vmatpush3.bf16.msra.mxu1 %v572_v26 }
  0x27   : > { %574 = vmatprep.subr.bf16.mxu1 %v718_v3 }
  0x2a   : > { %576 = vmatpush3.bf16.msra.mxu1 %v575_v29 }
  0x2b   : > { %577 = vmatprep.subr.bf16.mxu1 %v718_v3 }
  0x2e   : > { %579 = vmatpush3.bf16.msra.mxu1 %v578_v32 }
  0xee   : > { %v276_v33 = vpop.f32.mrb[0].mxu0 }
  0xef   : > { %v280_v34 = vmul.f32 5.656854, %v276_v33  ;;  %v514_v35 = vpop.f32.mrb[1].mxu0 }
  0xf1   : > { %548 = vmatmul.mubr.f32.vlgmr.msra.gmra.mrb[0].mxu1 %v280_v34 }
 0x1c4   : > { %v365_v36 = vpop.f32.mrb[0].mxu1 }
 0x1c5   : > { %370 = vst.msk [vmem:[%s188_s19] sm:$0xff] %vm206_vm1, %v365_v36  ;;  %v549_v37 = vpop.f32.mrb[1].mxu1 }
 0x1c6   : > { %651 = shalt.err (!%p648_p5)
}
 0x1c7   : > { %s652_s5 = scalar_lea.hbm %s868_s27, 128  ;;  %s656_s8 = scalar_lea.hbm %s919_s3, 256 }
 0x1c8   : > { %p653_p6 = scmp.ne.s32.totalorder %s868_s27, %s652_s5  ;;  %p657_p10 = scmp.lt.u32.totalorder %s868_s27, %s919_s3 }
 0x1c9   : > { %p658_p11 = scmp.lt.u32.totalorder %s656_s8, %s652_s5  ;;  %p660_p13 = scmp.lt.u32.totalorder %s652_s5, %s868_s27 }
 0x1ca   : > { %p654_p7 = pnand %p653_p6, %p782_p4 }
 0x1cb   : > { %p659_p12 = por %p658_p11, %p657_p10 }
 0x1cc   : > { %p655_p9 = pneg %p654_p7 }
 0x1cd   : > { %p661_p0 = por %p660_p13, %p659_p12 }
 0x1cf   : > { %p662_p1 = pnand %p661_p0, %p655_p9 }
 0x1d1   : > { %665 = shalt.err (!%p662_p1)
}
 0x1d2   : > { %580 = dma.vmem_to_hbm [thread:$0]  (%p782_p4), %s870_s21, 128, %s868_s27, %s372_s28  }
 0x1d3 PF: > { %p586_p2 = scmp.ge.s32.totalorder %s716_s17, 2  ;;  %s398_s11 = sand.u32 1, %s696_s12  }
 0x1d4   : > { %s399_s18 = scalar_lea.sflag [#allocation4], %s398_s11 }
 0x1d5   : > { %p583_p3 = pnand %p586_p2, %p789_p8 }
 0x1d7   : > { %691 = dma.done.wait (!%p583_p3), %s399_s18, 128  }
 0x1d8   : > { %693 = vsyncadd (!%p583_p3), %s399_s18, 4294967168  ;;  %s16_s17 = sadd.s32 1, %s716_s17   ;;  %s922_s12 = smov %s700_s13 }
 0x1d9   : > { %p13_p5 = scmp.ge.s32.totalorder %s16_s17, 4   ;;  %s923_s13 = smov %s704_s14 }
 0x1da   : > { %s924_s14 = smov %s795_s25  ;;  %s925_s15 = smov %s712_s16 }
 0x1db   : > { %s926_s16 = smov %s928_s20  ;;  %15 = sbr.rel (!%p13_p5) target bundleno = 4 (0x4), region = 74 }
 0x1e2   :  { %404 = vsyncpa [#allocation4], 1 }
 0x1e3   :  { %406 = vsyncpa [#allocation4 + $0x1], 1 }

</bundles_post_ra>
